<compile_context>
chip_gen: v7x
topology: tpu7x:2x2x1
jax: 0.10.0
libtpu: 0.0.40
codegen_flags: <defaults>
</compile_context>

<pallas_src>
import math

import jax
import jax.numpy as jnp
from jax import lax
from jax.experimental import pallas as pl
from jax.experimental.pallas import tpu as pltpu

LANE = 128
SUBLANE = 8

VMEM = pltpu.MemorySpace.VMEM
SMEM = pltpu.MemorySpace.SMEM
VMEM_SPEC = pl.BlockSpec(memory_space=VMEM)
SMEM_SPEC = pl.BlockSpec(memory_space=SMEM)


def _round_up(x, m):
    return ((x + m - 1) // m) * m


def _vmem_limit_bytes():
    """Scoped-VMEM limit to request: half of physical VMEM (generation-aware).

    v5e/v6e: 64 MiB of 128 MiB physical (their 16/32 MiB scoped defaults would
    block large row tiles); v7x: 32 MiB of 64 MiB physical."""
    try:
        cap = int(pltpu.get_tpu_info().vmem_capacity_bytes)
    except Exception:            # conservative fallback if the query is unavailable
        cap = 64 << 20
    return cap // 2


def pick_tile_rows(total_rows, n_streams, *, max_rows=4096):
    """Row tile for the [rows, 128] elementwise SWAG kernels.

    Largest 8-multiple such that `n_streams` double-buffered f32 streams fit in half
    the requested scoped-VMEM limit, capped at `max_rows`, and small enough that the
    row grid has >= 2 tiles (so the ("parallel",) row axis shards across v7x's two
    TensorCores; free on v5e/v6e)."""
    budget = _vmem_limit_bytes() // 2
    per_row = n_streams * 2 * LANE * 4            # double-buffered f32 streams
    cap = max(SUBLANE, (budget // per_row) // SUBLANE * SUBLANE)
    cap = min(cap, max_rows)
    two_tiles = _round_up(pl.cdiv(total_rows, 2), SUBLANE)
    return max(SUBLANE, min(cap, two_tiles))


# ---------------------------------------------------------------------------
# Wrapped module: 2-layer MLP (Linear -> ReLU -> Linear), torch Linear layout
# [out, in].  The flat SWAG state stores the *kernel-ready* padded operands
# (transposed weights, zero-padded, (8,128)-aligned tiles) back to back, so a row
# slice of the flat state IS an MLP operand: no per-sample repack.
# TODO(synk): this toy layout assumes every padded lane dim (IN/HID/OUT) fits one
# 128-lane tile; wider layers would span ceil(dim/128) lane tiles per weight row.
# ---------------------------------------------------------------------------
IN_DIM, HID_DIM, OUT_DIM = 32, 64, 4
IN_PAD, HID_PAD, OUT_PAD = 128, 128, 128
B_PAD = 8                                          # padded batch rows for the forward

ROW_W1 = 0                                         # w1.T tile: rows [0, IN_PAD)
ROW_B1 = ROW_W1 + IN_PAD                           # b1 tile:   rows [ROW_B1, +SUBLANE)
ROW_W2 = ROW_B1 + SUBLANE                          # w2.T tile: rows [ROW_W2, +HID_PAD)
ROW_B2 = ROW_W2 + HID_PAD                          # b2 tile:   rows [ROW_B2, +SUBLANE)
R_TOTAL = ROW_B2 + SUBLANE                         # 272 rows of 128 lanes


def pack_params_to_flat(w1, b1, w2, b2, r_pad):
    """Torch-layout params -> kernel-ready flat SWAG state [r_pad, 128] (f32)."""
    flat = jnp.zeros((r_pad, LANE), jnp.float32)
    flat = flat.at[ROW_W1:ROW_W1 + IN_DIM, :HID_DIM].set(w1.T)
    flat = flat.at[ROW_B1, :HID_DIM].set(b1)
    flat = flat.at[ROW_W2:ROW_W2 + HID_DIM, :OUT_DIM].set(w2.T)
    flat = flat.at[ROW_B2, :OUT_DIM].set(b2)
    return flat


# ---------------------------------------------------------------------------
# 1) Wrapped-module forward (SwagModel.forward == self.module(x)) on row slices of
#    the flat state.  bf16 MXU operands, f32 accumulation.
# ---------------------------------------------------------------------------
def _mlp_fwd_kernel(x_ref, w1_ref, b1_ref, w2_ref, b2_ref, o_ref):
    x = x_ref[...].astype(jnp.bfloat16)
    h = jnp.dot(x, w1_ref[...].astype(jnp.bfloat16),
                preferred_element_type=jnp.float32)
    h = jnp.maximum(h + b1_ref[...], 0.0)
    o = jnp.dot(h.astype(jnp.bfloat16), w2_ref[...].astype(jnp.bfloat16),
                preferred_element_type=jnp.float32) + b2_ref[...]
    o_ref[...] = o


def mlp_forward_from_flat(x_pad, flat):
    """Forward of the MLP whose parameters live in `flat` (zero-copy row slices of
    the kernel-ready layout; no pack/scatter on the hot path)."""
    w1t = flat[ROW_W1:ROW_W1 + IN_PAD]
    b1 = flat[ROW_B1:ROW_B1 + 1]
    w2t = flat[ROW_W2:ROW_W2 + HID_PAD]
    b2 = flat[ROW_B2:ROW_B2 + 1]
    return pl.pallas_call(
        _mlp_fwd_kernel,
        out_shape=jax.ShapeDtypeStruct((x_pad.shape[0], OUT_PAD), jnp.float32),
        in_specs=[VMEM_SPEC] * 5,
        out_specs=VMEM_SPEC,
    )(x_pad, w1t, b1, w2t, b2)


# ---------------------------------------------------------------------------
# 2) SWAG update_parameters hot path: swa_update + second_moment_update,
#    elementwise over the [R_PAD, 128] sublane-dense flat state.
# ---------------------------------------------------------------------------
def _swag_update_kernel(n_ref, pswa_ref, pmodel_ref, sec_ref, pswa_out, sec_out):
    inv_np1 = 1.0 / (n_ref[0] + 1.0)                 # computed in-kernel from SMEM n
    p_swa = pswa_ref[...]
    p_model = pmodel_ref[...]
    sec = sec_ref[...]
    pswa_out[...] = p_swa + (p_model - p_swa) * inv_np1          # swa_update
    sec_out[...] = sec + (p_model * p_model - sec) * inv_np1     # second_moment_update


def swag_update(p_swa, p_model, sec, n_averaged, *, tile_rows):
    """p_swa/p_model/sec: [R_PAD, 128] f32 -> (new_swa, new_sec).

    NOTE: p_swa and sec are donated into the outputs (input_output_aliases); callers
    must not reuse the pre-update arrays afterwards."""
    rows = p_swa.shape[0]
    n_f32 = jnp.asarray(n_averaged, jnp.float32).reshape(1)
    blk = pl.BlockSpec((tile_rows, LANE), lambda i: (i, 0))
    shape = jax.ShapeDtypeStruct(p_swa.shape, jnp.float32)
    return pl.pallas_call(
        _swag_update_kernel,
        out_shape=(shape, shape),
        grid=(rows // tile_rows,),
        in_specs=[SMEM_SPEC, blk, blk, blk],
        out_specs=(blk, blk),
        input_output_aliases={1: 0, 3: 1},           # p_swa -> new_swa, sec -> new_sec
        compiler_params=pltpu.CompilerParams(
            dimension_semantics=("parallel",),
            vmem_limit_bytes=_vmem_limit_bytes()),
        cost_estimate=pl.CostEstimate(
            flops=6 * rows * LANE, transcendentals=0,
            bytes_accessed=5 * rows * LANE * 4),
    )(n_f32, p_swa, p_model, sec)


# ---------------------------------------------------------------------------
# 3) SWAG sample():
#      var        = clamp(sec - mean^2, var_clamp)
#      cov_sample = sum_k z[k] * dev[k]              (VPU broadcast-FMA over k tiles)
#      sample     = mean + sqrt(scale) * (sqrt(var)*eps + cov_sample / sqrt(n-2))
#    Grid = (row tiles "parallel", k tiles "arbitrary"): mean/sec/eps/out blocks
#    ignore the k axis (stay resident); dev streams in k_tile slabs; cov accumulates
#    in a VMEM scratch and the output is finalized on the last k step.
# ---------------------------------------------------------------------------
def _swag_sample_kernel(s_ref, z_ref, mean_ref, sec_ref, eps_ref, dev_ref,
                        out_ref, cov_acc):
    kt = pl.program_id(1)
    k_tile = dev_ref.shape[0]
    k_base = kt * k_tile
    # Low-rank partial sum for this k tile (static, tiny; for k_tile >= ~8 switch to
    # lax.fori_loop(..., unroll=True)).  No wasted zeros-init add.
    part = z_ref[k_base] * dev_ref[0]
    for k in range(1, k_tile):
        part = part + z_ref[k_base + k] * dev_ref[k]

    @pl.when(kt == 0)
    def _():
        cov_acc[...] = part

    @pl.when(kt > 0)
    def _():
        cov_acc[...] = cov_acc[...] + part

    @pl.when(kt == pl.num_programs(1) - 1)
    def _():
        scale_sqrt, var_clamp, cov_on, n = s_ref[0], s_ref[1], s_ref[2], s_ref[3]
        # torch divides by sqrt(n_averaged - 2); guard n <= 2 (torch would NaN/inf).
        inv_sqrt_nm2 = jnp.where((cov_on > 0.0) & (n > 2.0),
                                 lax.rsqrt(jnp.maximum(n - 2.0, 1.0)), 0.0)
        mean = mean_ref[...]
        var = jnp.maximum(sec_ref[...] - mean * mean, var_clamp)
        rand = jnp.sqrt(var) * eps_ref[...]
        out_ref[...] = mean + scale_sqrt * (rand + cov_acc[...] * inv_sqrt_nm2)


def _prep_low_rank(dev, z, rows, cov):
    """Ensure at least one (possibly zero) deviation column so shapes stay static."""
    if (not cov) or dev.shape[0] == 0:
        return (jnp.zeros((1, rows, LANE), jnp.float32),
                jnp.zeros((1,), jnp.float32))
    return dev.astype(jnp.float32), z.astype(jnp.float32)


def _sample_scalars(n_averaged, scale, cov, var_clamp):
    return jnp.stack([
        jnp.float32(scale ** 0.5),
        jnp.float32(var_clamp),
        jnp.float32(1.0 if cov else 0.0),
        jnp.asarray(n_averaged, jnp.float32),
    ])


def swag_sample(mean, sec, dev, z, eps, n_averaged, *, tile_rows, k_tile=8,
                scale=0.5, cov=True, var_clamp=1e-30):
    """mean/sec/eps: [R_PAD,128]; dev: [K,R_PAD,128]; z: [K] -> sample [R_PAD,128]."""
    rows = mean.shape[0]
    dev, z = _prep_low_rank(dev, z, rows, cov)
    k_rank = dev.shape[0]
    k_tile = max(1, min(k_tile, k_rank))
    k_pad = _round_up(k_rank, k_tile)
    if k_pad != k_rank:                              # zero-padded ranks contribute 0
        dev = jnp.pad(dev, ((0, k_pad - k_rank), (0, 0), (0, 0)))
        z = jnp.pad(z, (0, k_pad - k_rank))
    scalars = _sample_scalars(n_averaged, scale, cov, var_clamp)
    blk = pl.BlockSpec((tile_rows, LANE), lambda i, kt: (i, 0))
    dev_blk = pl.BlockSpec((k_tile, tile_rows, LANE), lambda i, kt: (kt, i, 0))
    return pl.pallas_call(
        _swag_sample_kernel,
        out_shape=jax.ShapeDtypeStruct(mean.shape, jnp.float32),
        grid=(rows // tile_rows, k_pad // k_tile),
        in_specs=[SMEM_SPEC, SMEM_SPEC, blk, blk, blk, dev_blk],
        out_specs=blk,
        scratch_shapes=[pltpu.VMEM((tile_rows, LANE), jnp.float32)],
        compiler_params=pltpu.CompilerParams(
            dimension_semantics=("parallel", "arbitrary"),
            vmem_limit_bytes=_vmem_limit_bytes()),
        cost_estimate=pl.CostEstimate(
            flops=(2 * k_pad + 6) * rows * LANE,
            transcendentals=2 * rows * LANE,
            bytes_accessed=(4 + k_pad) * rows * LANE * 4),
    )(scalars, z, mean, sec, eps, dev)


# ---------------------------------------------------------------------------
# 4) Fused sample() + wrapped-module forward: the sampled parameter vector is built
#    in VMEM/registers, unflattened via static sublane-aligned row slices of the
#    kernel-ready layout, and fed straight to the MXU — no HBM round-trip for the
#    sampled weights, no repack, no extra kernel launches.
#    TODO(synk): single-block version (whole flat state in VMEM); a large model would
#    tile the sample stage and stream weight slabs into the matmuls instead.
# ---------------------------------------------------------------------------
def _sample_fwd_kernel(s_ref, z_ref, mean_ref, sec_ref, eps_ref, dev_ref,
                       x_ref, o_ref):
    scale_sqrt, var_clamp, cov_on, n = s_ref[0], s_ref[1], s_ref[2], s_ref[3]
    inv_sqrt_nm2 = jnp.where((cov_on > 0.0) & (n > 2.0),
                             lax.rsqrt(jnp.maximum(n - 2.0, 1.0)), 0.0)
    mean = mean_ref[...]
    var = jnp.maximum(sec_ref[...] - mean * mean, var_clamp)
    rand = jnp.sqrt(var) * eps_ref[...]
    cov = z_ref[0] * dev_ref[0]
    for k in range(1, dev_ref.shape[0]):             # static, K is tiny
        cov = cov + z_ref[k] * dev_ref[k]
    sample = mean + scale_sqrt * (rand + cov * inv_sqrt_nm2)
    # in-register unflatten: static, sublane-aligned row slices of the flat layout
    w1t = sample[ROW_W1:ROW_W1 + IN_PAD, :].astype(jnp.bfloat16)
    b1 = sample[ROW_B1:ROW_B1 + 1, :]
    w2t = sample[ROW_W2:ROW_W2 + HID_PAD, :].astype(jnp.bfloat16)
    b2 = sample[ROW_B2:ROW_B2 + 1, :]
    x = x_ref[...].astype(jnp.bfloat16)
    h = jnp.maximum(jnp.dot(x, w1t, preferred_element_type=jnp.float32) + b1, 0.0)
    o_ref[...] = jnp.dot(h.astype(jnp.bfloat16), w2t,
                         preferred_element_type=jnp.float32) + b2


def swag_sample_forward(mean, sec, dev, z, eps, n_averaged, x_pad, *,
                        scale=0.5, cov=True, var_clamp=1e-30):
    rows = mean.shape[0]
    dev, z = _prep_low_rank(dev, z, rows, cov)
    scalars = _sample_scalars(n_averaged, scale, cov, var_clamp)
    return pl.pallas_call(
        _sample_fwd_kernel,
        out_shape=jax.ShapeDtypeStruct((x_pad.shape[0], OUT_PAD), jnp.float32),
        in_specs=[SMEM_SPEC, SMEM_SPEC] + [VMEM_SPEC] * 5,
        out_specs=VMEM_SPEC,
        compiler_params=pltpu.CompilerParams(
            vmem_limit_bytes=_vmem_limit_bytes()),
    )(scalars, z, mean, sec, eps, dev, x_pad)


if __name__ == "__main__":
    key = jax.random.PRNGKey(0)
    B = 2

    # Shared row tile for the elementwise SWAG kernels (generation-aware, K-aware,
    # >= 2 row tiles so v7x's two TensorCores both work).
    K_TILE = 8
    TILE_ROWS = min(pick_tile_rows(R_TOTAL, 5),              # update: 3 in + 2 out
                    pick_tile_rows(R_TOTAL, 5 + K_TILE))     # sample: + k_tile dev
    R_PAD = _round_up(R_TOTAL, TILE_ROWS)

    # Deterministic wrapped-module parameters (torch Linear layout [out, in]).
    k1, k2, k3, k4, k5 = jax.random.split(key, 5)
    w1 = 0.1 * jax.random.normal(k1, (HID_DIM, IN_DIM), jnp.float32)
    b1 = 0.1 * jax.random.normal(k2, (HID_DIM,), jnp.float32)
    w2 = 0.1 * jax.random.normal(k3, (OUT_DIM, HID_DIM), jnp.float32)
    b2 = 0.1 * jax.random.normal(k4, (OUT_DIM,), jnp.float32)

    x = jax.random.normal(k5, (B, IN_DIM), jnp.float32)
    x_pad = jnp.zeros((B_PAD, IN_PAD), jnp.float32).at[:B, :IN_DIM].set(x)

    # Mask of meaningful (non-padding) positions in the flat layout (built once).
    ones_mask = pack_params_to_flat(jnp.ones_like(w1), jnp.ones_like(b1),
                                    jnp.ones_like(w2), jnp.ones_like(b2), R_PAD)

    # --- simulate SWAG training: several update_parameters() calls -------------
    swa_flat = jnp.zeros((R_PAD, LANE), jnp.float32)
    sec_flat = jnp.zeros((R_PAD, LANE), jnp.float32)
    swa_chk = jnp.zeros((R_PAD, LANE), jnp.float32)          # pure-JAX reference
    sec_chk = jnp.zeros((R_PAD, LANE), jnp.float32)
    dev_cols = []
    n_averaged = 0
    for t in range(4):
        kk = jax.random.fold_in(key, 100 + t)
        kn = jax.random.split(kk, 4)
        s = 0.01 * (t + 1)
        iterate = pack_params_to_flat(
            w1 + s * jax.random.normal(kn[0], w1.shape, jnp.float32),
            b1 + s * jax.random.normal(kn[1], b1.shape, jnp.float32),
            w2 + s * jax.random.normal(kn[2], w2.shape, jnp.float32),
            b2 + s * jax.random.normal(kn[3], b2.shape, jnp.float32), R_PAD)
        swa_flat, sec_flat = swag_update(swa_flat, iterate, sec_flat, n_averaged,
                                         tile_rows=TILE_ROWS)
        swa_chk = swa_chk + (iterate - swa_chk) / (n_averaged + 1.0)
        sec_chk = sec_chk + (iterate * iterate - sec_chk) / (n_averaged + 1.0)
        if n_averaged > 0:
            dev_cols.append(iterate - swa_flat)              # one torch dev column
        n_averaged += 1
    # TODO(synk): n_averaged and the growing dev-column list are host-side
    # bookkeeping (torch registered buffers / deepcopy of the module), not compute.

    K = len(dev_cols)
    dev = jnp.stack(dev_cols) if K else jnp.zeros((0, R_PAD, LANE), jnp.float32)

    assert jnp.allclose(swa_flat, swa_chk, rtol=1e-5, atol=1e-6)
    assert jnp.allclose(sec_flat, sec_chk, rtol=1e-5, atol=1e-6)

    # --- SwagModel.forward(x): wrapped module with the SWA-averaged params -----
    y_swa = mlp_forward_from_flat(x_pad, swa_flat)[:B, :OUT_DIM]

    def mlp_ref(flat):
        h = jnp.maximum(x_pad @ flat[ROW_W1:ROW_W1 + IN_PAD] + flat[ROW_B1], 0.0)
        return (h @ flat[ROW_W2:ROW_W2 + HID_PAD] + flat[ROW_B2])[:B, :OUT_DIM]

    assert jnp.allclose(y_swa, mlp_ref(swa_flat), rtol=2e-2, atol=2e-2)

    # --- SwagModel.sample(): draw a SWAG sample model, then run its forward ----
    ke, kz = jax.random.split(jax.random.fold_in(key, 999))
    eps = ones_mask * jax.random.normal(ke, (R_PAD, LANE), jnp.float32)
    z = jax.random.normal(kz, (K,), jnp.float32)

    # (a) general path: tiled sample kernel -> zero-copy row slice -> MLP kernel
    sample_flat = swag_sample(swa_flat, sec_flat, dev, z, eps, n_averaged,
                              tile_rows=TILE_ROWS, k_tile=K_TILE)
    y_sample = mlp_forward_from_flat(x_pad, sample_flat)[:B, :OUT_DIM]

    # (b) fused path: sample + forward in one kernel (no HBM round-trip)
    y_fused = swag_sample_forward(swa_flat, sec_flat, dev, z, eps, n_averaged,
                                  x_pad)[:B, :OUT_DIM]

    # pure-JAX reference of sample() (f32)
    var_ref = jnp.maximum(sec_flat - swa_flat * swa_flat, 1e-30)
    cov_ref = sum(z[k] * dev[k] for k in range(K)) if K else 0.0
    inv_ref = 1.0 / math.sqrt(n_averaged - 2.0) if n_averaged > 2 else 0.0
    sample_ref = swa_flat + math.sqrt(0.5) * (jnp.sqrt(var_ref) * eps
                                              + cov_ref * inv_ref)

    jax.block_until_ready((y_swa, y_sample, y_fused, sample_flat))
    assert jnp.allclose(sample_flat, sample_ref, rtol=1e-4, atol=1e-5)
    assert jnp.allclose(y_sample, mlp_ref(sample_ref), rtol=2e-2, atol=2e-2)
    assert jnp.allclose(y_fused, mlp_ref(sample_ref), rtol=2e-2, atol=2e-2)
    assert bool(jnp.all(jnp.isfinite(y_swa))) and bool(jnp.all(jnp.isfinite(y_fused)))
    print("KERNEL_OK")
</pallas_src>

<mosaic_0001>
module attributes {stable_mosaic.version = 11 : i64} {
  func.func @_swag_update_kernel(%arg0: i32, %arg1: memref<1xf32, #tpu.memory_space<smem>>, %arg2: memref<136x128xf32, #tpu.memory_space<vmem>>, %arg3: memref<136x128xf32, #tpu.memory_space<vmem>>, %arg4: memref<136x128xf32, #tpu.memory_space<vmem>>, %arg5: memref<136x128xf32, #tpu.memory_space<vmem>>, %arg6: memref<136x128xf32, #tpu.memory_space<vmem>>) attributes {dimension_semantics = [#tpu.dimension_semantics<parallel>], iteration_bounds = array<i64: 2>, scalar_prefetch = 0 : i64, scratch_operands = 0 : i64, tpu.core_type = #tpu.core_type<tc>, window_params = [{transform_indices = @transform_0, window_bounds = array<i64: 1>}, {transform_indices = @transform_1, window_bounds = array<i64: 136, 128>}, {transform_indices = @transform_2, window_bounds = array<i64: 136, 128>}, {transform_indices = @transform_3, window_bounds = array<i64: 136, 128>}, {transform_indices = @transform_4, window_bounds = array<i64: 136, 128>}, {transform_indices = @transform_5, window_bounds = array<i64: 136, 128>}]} {
    %c0 = arith.constant 0 : index
    %0 = memref.load %arg1[%c0] : memref<1xf32, #tpu.memory_space<smem>>
    %cst = arith.constant 1.000000e+00 : f32
    %1 = arith.addf %0, %cst : f32
    %cst_0 = arith.constant 1.000000e+00 : f32
    %2 = arith.divf %cst_0, %1 : f32
    %c0_1 = arith.constant 0 : index
    %c0_2 = arith.constant 0 : index
    %3 = vector.load %arg2[%c0_1, %c0_2] : memref<136x128xf32, #tpu.memory_space<vmem>>, vector<136x128xf32>
    %c0_3 = arith.constant 0 : index
    %c0_4 = arith.constant 0 : index
    %4 = vector.load %arg3[%c0_3, %c0_4] : memref<136x128xf32, #tpu.memory_space<vmem>>, vector<136x128xf32>
    %c0_5 = arith.constant 0 : index
    %c0_6 = arith.constant 0 : index
    %5 = vector.load %arg4[%c0_5, %c0_6] : memref<136x128xf32, #tpu.memory_space<vmem>>, vector<136x128xf32>
    %6 = arith.subf %4, %3 : vector<136x128xf32>
    %7 = vector.broadcast %2 : f32 to vector<136x128xf32>
    %8 = arith.mulf %6, %7 : vector<136x128xf32>
    %9 = arith.addf %3, %8 : vector<136x128xf32>
    %c0_7 = arith.constant 0 : index
    %c0_8 = arith.constant 0 : index
    %10 = vector.load %arg5[%c0_7, %c0_8] : memref<136x128xf32, #tpu.memory_space<vmem>>, vector<136x128xf32>
    tpu.vector_store %arg5[%c0_7, %c0_8], %9 {strides = array<i32>} : memref<136x128xf32, #tpu.memory_space<vmem>>, vector<136x128xf32>,
    %11 = arith.mulf %4, %4 : vector<136x128xf32>
    %12 = arith.subf %11, %5 : vector<136x128xf32>
    %13 = vector.broadcast %2 : f32 to vector<136x128xf32>
    %14 = arith.mulf %12, %13 : vector<136x128xf32>
    %15 = arith.addf %5, %14 : vector<136x128xf32>
    %c0_9 = arith.constant 0 : index
    %c0_10 = arith.constant 0 : index
    %16 = vector.load %arg6[%c0_9, %c0_10] : memref<136x128xf32, #tpu.memory_space<vmem>>, vector<136x128xf32>
    tpu.vector_store %arg6[%c0_9, %c0_10], %15 {strides = array<i32>} : memref<136x128xf32, #tpu.memory_space<vmem>>, vector<136x128xf32>,
    return
  }
  func.func @transform_0(%arg0: i32) -> i32 {
    %c0_i32 = arith.constant 0 : i32
    %c0_i32_0 = arith.constant 0 : i32
    return %c0_i32 : i32
  }
  func.func @transform_1(%arg0: i32) -> (i32, i32) {
    %c0_i32 = arith.constant 0 : i32
    %c0_i32_0 = arith.constant 0 : i32
    return %arg0, %c0_i32 : i32, i32
  }
  func.func @transform_2(%arg0: i32) -> (i32, i32) {
    %c0_i32 = arith.constant 0 : i32
    %c0_i32_0 = arith.constant 0 : i32
    return %arg0, %c0_i32 : i32, i32
  }
  func.func @transform_3(%arg0: i32) -> (i32, i32) {
    %c0_i32 = arith.constant 0 : i32
    %c0_i32_0 = arith.constant 0 : i32
    return %arg0, %c0_i32 : i32, i32
  }
  func.func @transform_4(%arg0: i32) -> (i32, i32) {
    %c0_i32 = arith.constant 0 : i32
    %c0_i32_0 = arith.constant 0 : i32
    return %arg0, %c0_i32 : i32, i32
  }
  func.func @transform_5(%arg0: i32) -> (i32, i32) {
    %c0_i32 = arith.constant 0 : i32
    %c0_i32_0 = arith.constant 0 : i32
    return %arg0, %c0_i32 : i32, i32
  }
}

</mosaic_0001>

<bundles_post_ra>
// kernel: tpu_custom_call.1
= control target key start
LH: loop header
LB: loop body
LE: loop exit
PB: predicated region body
PF: predicated region fallthrough
CT: control target
= control target key end

     0   :  { %s1768_s0 = inlined_call_operand.<no memory space> [shape: f32[1], index: 0, kind: input, shape index: {}]   ;;  %s1769_s1 = inlined_call_operand.hbm [shape: f32[272,128], index: 1, kind: input, shape index: {}, may-alias: {1,4}]   ;;  %s1770_s2 = inlined_call_operand.vmem [shape: f32[272,128], index: 2, kind: input, shape index: {}]   ;;  %s1771_s3 = inlined_call_operand.hbm [shape: f32[272,128], index: 3, kind: input, shape index: {}, may-alias: {3,5}]   ;;  %s1772_s4 = inlined_call_operand.hbm [shape: f32[272,128], index: 4, kind: output, shape index: {0}, may-alias: {1,4}]   ;;  %s1773_s5 = inlined_call_operand.hbm [shape: f32[272,128], index: 5, kind: output, shape index: {1}, may-alias: {3,5}]  }
   0x1   :  { %11 = sst [smem:[#allocation2]] %s1768_s0 }
   0x2   :  { %12 = vsyncpa [#allocation4], 0 }
   0x3   :  { %14 = vsyncpa [#allocation4 + $0x1], 0 }
   0x4   :  { %15 = vsyncpa [#allocation7], 0 }
   0x5   :  { %17 = vsyncpa [#allocation7 + $0x1], 0 }
   0x6   :  { %18 = vsyncpa [#allocation5], 0 }
   0x7   :  { %20 = vsyncpa [#allocation5 + $0x1], 0 }
   0x8   :  { %21 = vsyncpa [#allocation10], 0 }
   0x9   :  { %23 = vsyncpa [#allocation10 + $0x1], 0  ;;  %s993_s20 = smov 0   ;;  %s995_s21 = smov 0  }
   0xa   :  { %s997_s22 = smov 0   ;;  %s999_s23 = smov 0  }
   0xb LB: > { %s1014_s0 = sadd.s32 4294967295, %s950_s23   ;;  %s706_s24 = sadd.s32 4294967294, %s950_s23   ;;  %s950_s23 = sphi %s999_s23, %s1903_s23   ;;  %s946_s22 = sphi %s997_s22, %s1902_s22   ;;  %s942_s21 = sphi %s995_s21, %s1901_s21   ;;  %s938_s20 = sphi %s993_s20, %s1900_s20  }
   0xc   : > { %s1018_s25 = sadd.s32 1, %s950_s23   ;;  %s57_s26 = sadd.s32 1, %s946_s22 }
   0xd   : > { %s54_s27 = ssub.s32 %s950_s23, %s1018_s25  ;;  %p64_p0 = scmp.ne.s32.totalorder %s946_s22, %s942_s21 }
   0xe   : > { %p55_p1 = scmp.eq.s32.totalorder %s54_s27, 0  ;;  %p65_p2 = scmp.eq.s32.totalorder %s950_s23, 0 }
   0xf   : > { %p70_p3 = scmp.ne.s32.totalorder %s942_s21, %s938_s20  ;;  %p71_p4 = scmp.eq.s32.totalorder %s1014_s0, 0 }
  0x10   : > { %s1030_s28 = scalar_select %p55_p1, %s946_s22, %s57_s26  }
  0x11   : > { %p66_p5 = por %p65_p2, %p64_p0  ;;  %p1032_p6 = por %p71_p4, %p70_p3 }
  0x12   : > { %p146_p7 = scmp.eq.s32.totalorder %s1014_s0, 1  ;;  %p152_p8 = scmp.eq.s32.totalorder %s706_s24, 1 }
  0x13   : > { %s1811_s29 = scalar_select %p1032_p6, 1, 0 }
  0x14   : > { %p748_p10 = scmp.lt.s32.totalorder %s950_s23, 2  ;;  %p1039_p11 = por %p146_p7, %p64_p0 }
  0x15   : > { %p1043_p12 = por %p152_p8, %p70_p3  ;;  %s1048_s7 = sand.u32 1, %s946_s22  }
  0x16   : > { %s1812_s30 = scalar_select %p1039_p11, 1, 0 }
  0x17   : > { %s1813_s6 = scalar_select %p1043_p12, 1, 0 }
  0x18   : > { %s717_s8 = smul.u32 2176, %s950_s23  ;;  %p1059_p13 = pnand %p748_p10, %p66_p5 }
  0x19   : > { %s721_s9 = smul.u32 136, %s1048_s7  ;;  %s202_s16 = scalar_lea.sflag [#allocation4], %s1048_s7 }
  0x1a   : > { %s1057_s12 = scalar_lea.hbm %s1769_s1, %s717_s8  ;;  %p790_p1 = pneg %p1059_p13 }
  0x1b   : > { %s205_s14 = scalar_lea.vmem [#allocation3], %s721_s9  ;;  %s788_s17 = scalar_lea.hbm %s1057_s12, 2176 }
  0x1c   : > { %s212_s15 = sshll.u32 %s205_s14, 4  ;;  %p789_p0 = scmp.ne.s32.totalorder %s1057_s12, %s788_s17  ;;  %s1065_s15 = int_to_ptr.vmem [resolvable:$true] %s212_s15 }
  0x1d   : > { %s793_s24 = scalar_lea.hbm %s1769_s1, 4352  ;;  %p794_p4 = scmp.lt.u32.totalorder %s1057_s12, %s1769_s1 }
  0x1e   : > { %p791_p2 = pnand %p790_p1, %p789_p0  ;;  %p795_p5 = scmp.lt.u32.totalorder %s793_s24, %s788_s17 }
  0x1f   : > { %p797_p8 = scmp.lt.u32.totalorder %s788_s17, %s1057_s12 }
  0x20   : > { %p792_p3 = pneg %p791_p2  ;;  %p796_p7 = por %p795_p5, %p794_p4 }
  0x22   : > { %p798_p10 = por %p797_p8, %p796_p7 }
  0x24   : > { %p799_p9 = pnand %p798_p10, %p792_p3 }
  0x26   : > { %802 = shalt.err (!%p799_p9)
}
  0x27   : > { %s803_s10 = scalar_lea.vmem %s1065_s15, 2176  ;;  %s952_s11 = smov [#allocation3]  }
  0x28   : > { %p804_p0 = scmp.ne.s32.totalorder %s1065_s15, %s803_s10  ;;  %s808_s14 = sshll.u32 %s952_s11, 4  ;;  %s809_s14 = int_to_ptr.vmem [resolvable:$false] %s808_s14 }
  0x29   : > { %s810_s18 = scalar_lea.vmem %s809_s14, 4352  ;;  %p811_p11 = scmp.lt.s32.totalorder %s1065_s15, %s809_s14 }
  0x2a   : > { %p806_p2 = pnand %p804_p0, %p790_p1  ;;  %p812_p4 = scmp.lt.s32.totalorder %s810_s18, %s803_s10 }
  0x2c   : > { %p807_p12 = pneg %p806_p2  ;;  %p813_p5 = por %p812_p4, %p811_p11 }
  0x2e   : > { %p814_p7 = pnand %p813_p5, %p807_p12 }
  0x30   : > { %817 = shalt.err (!%p814_p7)
}
  0x31   : > { %s953_s17 = smov 128   ;;  %s954_s19 = smov 8  }
  0x32   : > { %737 = dma.hbm_to_vmem [thread:$0]  (!%p1059_p13), %s1057_s12, 2176, %s1065_s15, %s202_s16, %s953_s17, %s953_s17, %s954_s19  }
  0x33   : > { %p711_p9 = scmp.ge.s32.totalorder %s950_s23, 1  ;;  %p250_p11 = scmp.lt.s32.totalorder %s950_s23, 3 }
  0x34   : > { %s1109_s10 = scalar_lea.hbm %s1771_s3, %s717_s8  ;;  %s235_s11 = scalar_lea.vmem [#allocation6], %s721_s9 }
  0x35   : > { %p1100_p12 = pnand %p711_p9, %p250_p11  ;;  %s242_s14 = sshll.u32 %s235_s11, 4  ;;  %s1113_s14 = int_to_ptr.vmem [resolvable:$true] %s242_s14 }
  0x36   : > { %s232_s12 = scalar_lea.sflag [#allocation7], %s1048_s7  ;;  %s818_s15 = scalar_lea.hbm %s1109_s10, 2176 }
  0x37   : > { %p819_p3 = scmp.ne.s32.totalorder %s1109_s10, %s818_s15  ;;  %s823_s8 = scalar_lea.hbm %s1771_s3, 4352 }
  0x38   : > { %p824_p0 = scmp.lt.u32.totalorder %s1109_s10, %s1771_s3  ;;  %p825_p2 = scmp.lt.u32.totalorder %s823_s8, %s818_s15 }
  0x39   : > { %p821_p8 = pnand %p819_p3, %p790_p1  ;;  %p827_p5 = scmp.lt.u32.totalorder %s818_s15, %s1109_s10 }
  0x3a   : > { %p826_p4 = por %p825_p2, %p824_p0 }
  0x3b   : > { %p822_p10 = pneg %p821_p8 }
  0x3c   : > { %p828_p7 = por %p827_p5, %p826_p4 }
  0x3e   : > { %p829_p9 = pnand %p828_p7, %p822_p10 }
  0x40   : > { %832 = shalt.err (!%p829_p9)
}
  0x41   : > { %s833_s9 = scalar_lea.vmem %s1113_s14, 2176  ;;  %s955_s11 = smov [#allocation6]  }
  0x42   : > { %p834_p11 = scmp.ne.s32.totalorder %s1113_s14, %s833_s9  ;;  %s838_s16 = sshll.u32 %s955_s11, 4  ;;  %s839_s16 = int_to_ptr.vmem [resolvable:$false] %s838_s16 }
  0x43   : > { %s840_s18 = scalar_lea.vmem %s839_s16, 4352  ;;  %p841_p6 = scmp.lt.s32.totalorder %s1113_s14, %s839_s16 }
  0x44   : > { %p836_p3 = pnand %p834_p11, %p790_p1  ;;  %p842_p0 = scmp.lt.s32.totalorder %s840_s18, %s833_s9 }
  0x46   : > { %p837_p8 = pneg %p836_p3  ;;  %p843_p2 = por %p842_p0, %p841_p6 }
  0x48   : > { %p844_p4 = pnand %p843_p2, %p837_p8 }
  0x4a   : > { %847 = shalt.err (!%p844_p4)
}
  0x4b   : > { %740 = dma.hbm_to_vmem [thread:$0]  (!%p1059_p13), %s1109_s10, 2176, %s1113_s14, %s232_s12, %s953_s17, %s953_s17, %s954_s19  }
  0x4c   : > { %254 = sbr.rel (%p1100_p12) target bundleno = 216 (0xd8), region = 36 }
  0x53   : > { %s1147_s15 = sand.u32 1, %s942_s21   ;;  %p1816_p6 = scmp.ne.s32.totalorder %s1811_s29, 0 }
  0x54   : > { %s1150_s8 = smul.u32 136, %s1147_s15  ;;  %s257_s13 = scalar_lea.sflag [#allocation4], %s1147_s15 }
  0x56   : > { %s1154_s26 = scalar_lea.vmem [#allocation3], %s1150_s8 }
  0x57   : > { %921 = dma.done.wait (%p1816_p6), %s257_s13, 2176  }
  0x58   : > { %923 = vsyncadd (%p1816_p6), %s257_s13, 4294965120  ;;  %s266_s7 = scalar_lea.sflag [#allocation7], %s1147_s15  ;;  %s1162_s17 = scalar_lea.vmem [#allocation6], %s1150_s8 }
  0x59   : > { %925 = dma.done.wait (%p1816_p6), %s266_s7, 2176  }
  0x5a   : > { %927 = vsyncadd (%p1816_p6), %s266_s7, 4294965120  ;;  %s321_s19 = sld [smem:[#allocation2]]  ;;  %s312_s10 = smul.u32 17, %s1014_s0  ;;  %v1175_v2 = vld [vmem:[%s1154_s26] sm:$0xff]  ;;  %v1178_v3 = vld [vmem:[%s1154_s26 + $0x8] sm:$0xff] }
  0x5b   : > { %v1181_v4 = vld [vmem:[%s1154_s26 + $0x10] sm:$0xff]  ;;  %v1184_v5 = vld [vmem:[%s1154_s26 + $0x18] sm:$0xff]  ;;  %v1187_v6 = vld [vmem:[%s1154_s26 + $0x20] sm:$0xff]  ;;  %s719_s11 = smul.u32 2176, %s1014_s0  ;;  %s1542_s16 = scalar_lea.vmem [#allocation8], %s1150_s8 }
  0x5c   : > { %p313_p13 = scmp.lt.s32.totalorder %s312_s10, 33  ;;  %v1190_v7 = vld [vmem:[%s1154_s26 + $0x28] sm:$0xff]  ;;  %v1193_v8 = vld [vmem:[%s1154_s26 + $0x30] sm:$0xff]  ;;  %v1196_v9 = vld [vmem:[%s1154_s26 + $0x38] sm:$0xff]  ;;  %s550_s18 = sshll.u32 %s1542_s16, 4  ;;  %s1573_s18 = int_to_ptr.vmem [resolvable:$true] %s550_s18 }
  0x5d   : > { %v1199_v10 = vld [vmem:[%s1154_s26 + $0x40] sm:$0xff]  ;;  %v1205_v12 = vld [vmem:[%s1154_s26 + $0x48] sm:$0xff]  ;;  %v1208_v13 = vld [vmem:[%s1154_s26 + $0x50] sm:$0xff]  ;;  %s1565_s7 = scalar_lea.hbm %s1772_s4, %s719_s11  ;;  %p1878_p12 = scmp.ne.s32.totalorder %s1812_s30, 0 }
  0x5e   : > { %s1905_s10 = smov (!%p313_p13, %s312_s10), 33  ;;  %v1211_v14 = vld [vmem:[%s1154_s26 + $0x58] sm:$0xff]  ;;  %v1217_v16 = vld [vmem:[%s1154_s26 + $0x60] sm:$0xff]  ;;  %v1220_v17 = vld [vmem:[%s1154_s26 + $0x68] sm:$0xff] }
  0x5f   : > { %s712_s29 = sshll.u32 %s1905_s10, 3  ;;  %1817 = vst [vmem:[#allocation15_spill] sm:$0xff] %v1217_v16  ;;  %1818 = vst [vmem:[#allocation16_spill] sm:$0xff] %v1220_v17  ;;  %v1223_v18 = vld [vmem:[%s1154_s26 + $0x70] sm:$0xff]  ;;  %v1232_v21 = vld [vmem:[%s1154_s26 + $0x78] sm:$0xff] }
  0x60   : > { %s322_s24 = sadd.f32 1.0, %s321_s19  ;;  %s1172_s27 = scalar_lea.vmem %s1770_s2, %s712_s29  ;;  %1819 = vst [vmem:[#allocation17_spill] sm:$0xff] %v1223_v18  ;;  %1820 = vst [vmem:[#allocation18_spill] sm:$0xff] %v1232_v21  ;;  %v1235_v22 = vld [vmem:[%s1154_s26 + $0x80] sm:$0xff]  ;;  %v1323_v55 = vld [vmem:[%s1162_s17] sm:$0xff] }
  0x61   : > { %v1202_v11 = vld [vmem:[%s1172_s27] sm:$0xff]  ;;  %v1214_v15 = vld [vmem:[%s1172_s27 + $0x8] sm:$0xff]  ;;  %v1226_v19 = vld [vmem:[%s1172_s27 + $0x10] sm:$0xff]  ;;  %1821 = vst [vmem:[#allocation19_spill] sm:$0xff] %v1235_v22  ;;  %s848_s19 = scalar_lea.vmem %s1573_s18, 2176 }
  0x62   : > { %v323_v0 = vstv %s322_s24  ;;  %v1229_v20 = vld [vmem:[%s1172_s27 + $0x18] sm:$0xff]  ;;  %v1238_v23 = vld [vmem:[%s1172_s27 + $0x20] sm:$0xff]  ;;  %v1241_v24 = vld [vmem:[%s1172_s27 + $0x28] sm:$0xff]  ;;  %v1254_v29 = vmul.f32 %v1202_v11, %v1202_v11  ;;  %v1273_v36 = vmul.f32 %v1214_v15, %v1214_v15  ;;  %v1292_v43 = vmul.f32 %v1226_v19, %v1226_v19  ;;  %p849_p1 = scmp.ne.s32.totalorder %s1573_s18, %s848_s19  ;;  %s956_s24 = smov [#allocation8]  }
  0x63   : > { %786 = vrcp.f32 %v323_v0  ;;  %v1244_v25 = vld [vmem:[%s1172_s27 + $0x30] sm:$0xff]  ;;  %v1257_v30 = vld [vmem:[%s1172_s27 + $0x38] sm:$0xff]  ;;  %v1260_v31 = vld [vmem:[%s1172_s27 + $0x40] sm:$0xff]  ;;  %v1311_v50 = vmul.f32 %v1229_v20, %v1229_v20  ;;  %v1330_v57 = vmul.f32 %v1238_v23, %v1238_v23  ;;  %v1347_v63 = vmul.f32 %v1241_v24, %v1241_v24  ;;  %s852_s10 = sshll.u32 %s956_s24, 4  ;;  %s853_s10 = int_to_ptr.vmem [resolvable:$false] %s852_s10 }
  0x64   : > { %v1263_v32 = vld [vmem:[%s1172_s27 + $0x48] sm:$0xff]  ;;  %1822 = vst [vmem:[#allocation20_spill] sm:$0xff] %v1273_v36  ;;  %v1276_v37 = vld [vmem:[%s1172_s27 + $0x50] sm:$0xff]  ;;  %v1279_v38 = vld [vmem:[%s1172_s27 + $0x58] sm:$0xff]  ;;  %v1351_v0 = vmul.f32 %v1244_v25, %v1244_v25  ;;  %v1364_v54 = vmul.f32 %v1257_v30, %v1257_v30  ;;  %v1368_v53 = vmul.f32 %v1260_v31, %v1260_v31  ;;  %v1841_v21 = vsub.f32 %v1214_v15, %v1178_v3  ;;  %p850_p10 = pnand %p849_p1, %p1878_p12  ;;  %s854_s29 = scalar_lea.vmem %s853_s10, 4352 }
  0x65   : > { %v1282_v39 = vld [vmem:[%s1172_s27 + $0x60] sm:$0xff]  ;;  %v1295_v44 = vld [vmem:[%s1172_s27 + $0x68] sm:$0xff]  ;;  %v1298_v45 = vld [vmem:[%s1172_s27 + $0x70] sm:$0xff]  ;;  %v1372_v52 = vmul.f32 %v1263_v32, %v1263_v32  ;;  %v1376_v49 = vmul.f32 %v1276_v37, %v1276_v37  ;;  %v1389_v41 = vmul.f32 %v1279_v38, %v1279_v38  ;;  %v1842_v36 = vsub.f32 %v1226_v19, %v1181_v4  ;;  %p855_p7 = scmp.lt.s32.totalorder %s1573_s18, %s853_s10  ;;  %p856_p9 = scmp.lt.s32.totalorder %s854_s29, %s848_s19 }
  0x66   : > { %1823 = vst [vmem:[#allocation21_spill] sm:$0xff] %v1295_v44  ;;  %1824 = vst [vmem:[#allocation22_spill] sm:$0xff] %v1298_v45  ;;  %v1301_v46 = vld [vmem:[%s1172_s27 + $0x78] sm:$0xff]  ;;  %v1314_v51 = vld [vmem:[%s1172_s27 + $0x80] sm:$0xff]  ;;  %v1393_v40 = vmul.f32 %v1282_v39, %v1282_v39  ;;  %v1397_v35 = vmul.f32 %v1295_v44, %v1295_v44  ;;  %v1401_v34 = vmul.f32 %v1298_v45, %v1298_v45  ;;  %p851_p5 = pneg %p850_p10 }
  0x67   : > { %1825 = vst [vmem:[#allocation23_spill] sm:$0xff] %v1301_v46  ;;  %1826 = vst [vmem:[#allocation24_spill] sm:$0xff] %v1314_v51  ;;  %v1326_v56 = vld [vmem:[%s1162_s17 + $0x8] sm:$0xff]  ;;  %v1337_v60 = vld [vmem:[%s1162_s17 + $0x10] sm:$0xff]  ;;  %v1414_v26 = vmul.f32 %v1301_v46, %v1301_v46  ;;  %v1418_v22 = vmul.f32 %v1314_v51, %v1314_v51  ;;  %v1840_v51 = vsub.f32 %v1202_v11, %v1175_v2  ;;  %p857_p11 = por %p856_p9, %p855_p7 }
  0x68   : > { %1827 = vst [vmem:[#allocation25_spill] sm:$0xff] %v1326_v56  ;;  %v1340_v61 = vld [vmem:[%s1162_s17 + $0x18] sm:$0xff]  ;;  %v1343_v62 = vld [vmem:[%s1162_s17 + $0x20] sm:$0xff]  ;;  %v1357_v59 = vld [vmem:[%s1162_s17 + $0x30] sm:$0xff]  ;;  %v1843_v46 = vsub.f32 %v1229_v20, %v1184_v5  ;;  %v1844_v11 = vsub.f32 %v1238_v23, %v1187_v6  ;;  %v1845_v15 = vsub.f32 %v1241_v24, %v1190_v7  ;;  %v1846_v19 = vsub.f32 %v1244_v25, %v1193_v8 }
  0x69   : > { %v1360_v58 = vld [vmem:[%s1162_s17 + $0x38] sm:$0xff]  ;;  %v1379_v48 = vld [vmem:[%s1162_s17 + $0x40] sm:$0xff]  ;;  %v1382_v47 = vld [vmem:[%s1162_s17 + $0x48] sm:$0xff]  ;;  %1828 = vst [vmem:[#allocation26_spill] sm:$0xff] %v1389_v41  ;;  %v1847_v20 = vsub.f32 %v1257_v30, %v1196_v9  ;;  %v1848_v23 = vsub.f32 %v1260_v31, %v1199_v10  ;;  %v1849_v24 = vsub.f32 %v1263_v32, %v1205_v12  ;;  %v1850_v25 = vsub.f32 %v1276_v37, %v1208_v13  ;;  %p858_p3 = pnand %p857_p11, %p851_p5 }
  0x6a   : > { %v1385_v42 = vld [vmem:[%s1162_s17 + $0x50] sm:$0xff]  ;;  %1829 = vst [vmem:[#allocation27_spill] sm:$0xff] %v1393_v40  ;;  %1830 = vst [vmem:[#allocation28_spill] sm:$0xff] %v1397_v35  ;;  %v1404_v33 = vld [vmem:[%s1162_s17 + $0x58] sm:$0xff]  ;;  %v1851_v30 = vsub.f32 %v1279_v38, %v1211_v14 }
  0x6b   : > { %1831 = vst [vmem:[#allocation29_spill] sm:$0xff] %v1401_v34  ;;  %1832 = vst [vmem:[#allocation30_spill] sm:$0xff] %v1404_v33  ;;  %v1407_v28 = vld [vmem:[%s1162_s17 + $0x60] sm:$0xff]  ;;  %v1410_v27 = vld [vmem:[%s1162_s17 + $0x68] sm:$0xff] }
  0x6c   : > { %1833 = vst [vmem:[#allocation31_spill] sm:$0xff] %v1407_v28  ;;  %1834 = vst [vmem:[#allocation32_spill] sm:$0xff] %v1410_v27  ;;  %v1425_v45 = vld [vmem:[%s1162_s17 + $0x70] sm:$0xff]  ;;  %v1428_v17 = vld [vmem:[%s1162_s17 + $0x78] sm:$0xff] }
  0x6d   : > { %v787_v1 = vpop.eup %786  ;;  %1835 = vst [vmem:[#allocation33_spill] sm:$0xff] %v1414_v26  ;;  %1836 = vst [vmem:[#allocation34_spill] sm:$0xff] %v1418_v22  ;;  %v1431_v44 = vld [vmem:[%s1162_s17 + $0x80] sm:$0xff]  ;;  %v1852_v31 = vld [vmem:[#allocation15_spill] sm:$0xff] }
  0x6e   : > { %724 = vpush %v787_v1  ;;  %v1354_v1 = vld [vmem:[%s1162_s17 + $0x28] sm:$0xff]  ;;  %1837 = vst [vmem:[#allocation35_spill] sm:$0xff] %v1425_v45  ;;  %v1854_v22 = vld [vmem:[#allocation21_spill] sm:$0xff]  ;;  %s532_s17 = scalar_lea.sflag [#allocation5], %s1147_s15 }
  0x6f   : > { %1838 = vst [vmem:[#allocation36_spill] sm:$0xff] %v1428_v17  ;;  %1839 = vst [vmem:[#allocation37_spill] sm:$0xff] %v1431_v44  ;;  %v1853_v44 = vsub.f32 %v1282_v39, %v1852_v31  ;;  %v1855_v32 = vld [vmem:[#allocation16_spill] sm:$0xff]  ;;  %v1857_v26 = vld [vmem:[#allocation22_spill] sm:$0xff] }
  0x70   : > { %v1856_v17 = vsub.f32 %v1854_v22, %v1855_v32  ;;  %v1858_v37 = vld [vmem:[#allocation17_spill] sm:$0xff]  ;;  %v1860_v27 = vld [vmem:[#allocation23_spill] sm:$0xff]  ;;  %v1861_v35 = vld [vmem:[#allocation18_spill] sm:$0xff] }
  0x71   : > { %v1859_v34 = vsub.f32 %v1857_v26, %v1858_v37  ;;  %v1862_v38 = vsub.f32 %v1860_v27, %v1861_v35  ;;  %v1863_v28 = vld [vmem:[#allocation24_spill] sm:$0xff]  ;;  %v1864_v39 = vld [vmem:[#allocation19_spill] sm:$0xff] }
  0x72   : > { %v1865_v40 = vsub.f32 %v1863_v28, %v1864_v39 }
  0x9f   : > { %s725_s9 = spop %724 }
  0xa0   : > { %v1457_v56 = vstv %s725_s9 }
  0xa1   : > { %v395_v33 = vmul.f32 %v1457_v56, %v1840_v51  ;;  %v396_v18 = vmul.f32 %v1457_v56, %v1841_v21  ;;  %v397_v45 = vmul.f32 %v1457_v56, %v1842_v36  ;;  %v398_v16 = vmul.f32 %v1457_v56, %v1843_v46 }
  0xa2   : > { %v399_v51 = vmul.f32 %v1457_v56, %v1844_v11  ;;  %v400_v21 = vmul.f32 %v1457_v56, %v1845_v15  ;;  %v401_v36 = vmul.f32 %v1457_v56, %v1846_v19  ;;  %v402_v46 = vmul.f32 %v1457_v56, %v1847_v20 }
  0xa3   : > { %v403_v11 = vmul.f32 %v1457_v56, %v1848_v23  ;;  %v404_v15 = vmul.f32 %v1457_v56, %v1849_v24  ;;  %v405_v19 = vmul.f32 %v1457_v56, %v1850_v25  ;;  %v406_v20 = vmul.f32 %v1457_v56, %v1851_v30 }
  0xa4   : > { %v407_v23 = vmul.f32 %v1457_v56, %v1853_v44  ;;  %v408_v24 = vmul.f32 %v1457_v56, %v1856_v17  ;;  %v409_v25 = vmul.f32 %v1457_v56, %v1859_v34  ;;  %v410_v30 = vmul.f32 %v1457_v56, %v1862_v38 }
  0xa5   : > { %v411_v44 = vmul.f32 %v1457_v56, %v1865_v40  ;;  %v412_v22 = vadd.f32 %v395_v33, %v1175_v2  ;;  %v413_v17 = vadd.f32 %v396_v18, %v1178_v3  ;;  %v414_v41 = vadd.f32 %v397_v45, %v1181_v4  ;;  %v1868_v18 = vld [vmem:[#allocation25_spill] sm:$0xff] }
  0xa6   : > { %v415_v26 = vadd.f32 %v398_v16, %v1184_v5  ;;  %v416_v34 = vadd.f32 %v399_v51, %v1187_v6  ;;  %v417_v27 = vadd.f32 %v400_v21, %v1190_v7  ;;  %v418_v38 = vadd.f32 %v401_v36, %v1193_v8  ;;  %v1867_v16 = vld [vmem:[#allocation20_spill] sm:$0xff] }
  0xa7   : > { %v419_v2 = vadd.f32 %v402_v46, %v1196_v9  ;;  %v420_v3 = vadd.f32 %v403_v11, %v1199_v10  ;;  %v421_v4 = vadd.f32 %v404_v15, %v1205_v12  ;;  %v422_v5 = vadd.f32 %v405_v19, %v1208_v13  ;;  %429 = vst [vmem:[%s1542_s16] sm:$0xff] %v412_v22 }
  0xa8   : > { %430 = vst [vmem:[%s1542_s16 + $0x8] sm:$0xff] %v413_v17  ;;  %431 = vst [vmem:[%s1542_s16 + $0x10] sm:$0xff] %v414_v41  ;;  %v423_v6 = vadd.f32 %v406_v20, %v1211_v14  ;;  %v424_v7 = vadd.f32 %v407_v23, %v1852_v31  ;;  %v425_v8 = vadd.f32 %v408_v24, %v1855_v32 }
  0xa9   : > { %v426_v9 = vadd.f32 %v409_v25, %v1858_v37  ;;  %432 = vst [vmem:[%s1542_s16 + $0x18] sm:$0xff] %v415_v26  ;;  %433 = vst [vmem:[%s1542_s16 + $0x20] sm:$0xff] %v416_v34  ;;  %v427_v10 = vadd.f32 %v410_v30, %v1861_v35  ;;  %v428_v12 = vadd.f32 %v411_v44, %v1864_v39 }
  0xaa   : > { %434 = vst [vmem:[%s1542_s16 + $0x28] sm:$0xff] %v417_v27  ;;  %435 = vst [vmem:[%s1542_s16 + $0x30] sm:$0xff] %v418_v38  ;;  %v1866_v13 = vsub.f32 %v1254_v29, %v1323_v55  ;;  %v1869_v28 = vsub.f32 %v1867_v16, %v1868_v18  ;;  %v1870_v35 = vsub.f32 %v1292_v43, %v1337_v60 }
  0xab   : > { %436 = vst [vmem:[%s1542_s16 + $0x38] sm:$0xff] %v419_v2  ;;  %437 = vst [vmem:[%s1542_s16 + $0x40] sm:$0xff] %v420_v3  ;;  %v1871_v29 = vsub.f32 %v1311_v50, %v1340_v61  ;;  %v1872_v45 = vsub.f32 %v1330_v57, %v1343_v62  ;;  %v1873_v21 = vsub.f32 %v1347_v63, %v1354_v1 }
  0xac   : > { %438 = vst [vmem:[%s1542_s16 + $0x48] sm:$0xff] %v421_v4  ;;  %439 = vst [vmem:[%s1542_s16 + $0x50] sm:$0xff] %v422_v5  ;;  %v480_v14 = vmul.f32 %v1866_v13, %v1457_v56  ;;  %v481_v33 = vmul.f32 %v1869_v28, %v1457_v56  ;;  %v482_v40 = vmul.f32 %v1870_v35, %v1457_v56 }
  0xad   : > { %440 = vst [vmem:[%s1542_s16 + $0x58] sm:$0xff] %v423_v6  ;;  %441 = vst [vmem:[%s1542_s16 + $0x60] sm:$0xff] %v424_v7  ;;  %v483_v41 = vmul.f32 %v1871_v29, %v1457_v56  ;;  %v484_v51 = vmul.f32 %v1872_v45, %v1457_v56  ;;  %v485_v36 = vmul.f32 %v1873_v21, %v1457_v56 }
  0xae   : > { %442 = vst [vmem:[%s1542_s16 + $0x68] sm:$0xff] %v425_v8  ;;  %443 = vst [vmem:[%s1542_s16 + $0x70] sm:$0xff] %v426_v9  ;;  %v1874_v43 = vsub.f32 %v1351_v0, %v1357_v59  ;;  %v1875_v50 = vsub.f32 %v1364_v54, %v1360_v58  ;;  %v1876_v57 = vsub.f32 %v1368_v53, %v1379_v48 }
  0xaf   : > { %444 = vst [vmem:[%s1542_s16 + $0x78] sm:$0xff] %v427_v10  ;;  %445 = vst [vmem:[%s1542_s16 + $0x80] sm:$0xff] %v428_v12  ;;  %v1877_v63 = vsub.f32 %v1372_v52, %v1382_v47 }
  0xb0   : > { %v486_v46 = vmul.f32 %v1874_v43, %v1457_v56  ;;  %v487_v11 = vmul.f32 %v1875_v50, %v1457_v56  ;;  %v488_v15 = vmul.f32 %v1876_v57, %v1457_v56 }
  0xb1   : > { %v489_v19 = vmul.f32 %v1877_v63, %v1457_v56 }
  0xb2   : > { %861 = shalt.err (!%p858_p3)
}
  0xb3   : > { %s862_s14 = scalar_lea.hbm %s1565_s7, 2176  ;;  %s866_s9 = scalar_lea.hbm %s1772_s4, 4352 }
  0xb4   : > { %p863_p8 = scmp.ne.s32.totalorder %s1565_s7, %s862_s14  ;;  %p867_p4 = scmp.lt.u32.totalorder %s1565_s7, %s1772_s4 }
  0xb5   : > { %p868_p6 = scmp.lt.u32.totalorder %s866_s9, %s862_s14  ;;  %p870_p1 = scmp.lt.u32.totalorder %s862_s14, %s1565_s7 }
  0xb6   : > { %p864_p0 = pnand %p863_p8, %p1878_p12 }
  0xb7   : > { %p869_p13 = por %p868_p6, %p867_p4 }
  0xb8   : > { %p865_p2 = pneg %p864_p0 }
  0xb9   : > { %p871_p10 = por %p870_p1, %p869_p13 }
  0xbb   : > { %p872_p5 = pnand %p871_p10, %p865_p2 }
  0xbd   : > { %875 = shalt.err (!%p872_p5)
}
  0xbe   : > { %s957_s26 = smov 128   ;;  %s958_s19 = smov 8   ;;  %v1879_v52 = vsub.f32 %v1376_v49, %v1385_v42  ;;  %v1880_v54 = vld [vmem:[#allocation26_spill] sm:$0xff]  ;;  %v1883_v23 = vld [vmem:[#allocation27_spill] sm:$0xff]  ;;  %v1886_v25 = vld [vmem:[#allocation28_spill] sm:$0xff]  ;;  %v497_v7 = vadd.f32 %v480_v14, %v1323_v55  ;;  %v498_v8 = vadd.f32 %v481_v33, %v1868_v18  ;;  %v499_v9 = vadd.f32 %v482_v40, %v1337_v60 }
  0xbf   : > { %730 = dma.vmem_to_hbm [thread:$0]  (%p1878_p12), %s1573_s18, 2176, %s1565_s7, %s532_s17, %s957_s26, %s957_s26, %s958_s19   ;;  %v1881_v0 = vld [vmem:[#allocation30_spill] sm:$0xff]  ;;  %v1884_v32 = vld [vmem:[#allocation31_spill] sm:$0xff]  ;;  %v1887_v30 = vld [vmem:[#allocation32_spill] sm:$0xff]  ;;  %v500_v10 = vadd.f32 %v483_v41, %v1340_v61  ;;  %v501_v12 = vadd.f32 %v484_v51, %v1343_v62  ;;  %v503_v55 = vadd.f32 %v486_v46, %v1357_v59  ;;  %v504_v60 = vadd.f32 %v487_v11, %v1360_v58 }
  0xc0   : > { %v490_v53 = vmul.f32 %v1879_v52, %v1457_v56  ;;  %v1882_v20 = vsub.f32 %v1880_v54, %v1881_v0  ;;  %v1885_v24 = vsub.f32 %v1883_v23, %v1884_v32  ;;  %v1888_v39 = vsub.f32 %v1886_v25, %v1887_v30  ;;  %v1889_v22 = vld [vmem:[#allocation29_spill] sm:$0xff]  ;;  %v1890_v17 = vld [vmem:[#allocation35_spill] sm:$0xff]  ;;  %v1893_v27 = vld [vmem:[#allocation36_spill] sm:$0xff]  ;;  %s1682_s18 = scalar_lea.vmem [#allocation9], %s1150_s8  ;;  %s1711_s24 = scalar_lea.hbm %s1773_s5, %s719_s11 }
  0xc1   : > { %v1891_v49 = vsub.f32 %v1889_v22, %v1890_v17  ;;  %v1892_v34 = vld [vmem:[#allocation33_spill] sm:$0xff]  ;;  %v1895_v3 = vld [vmem:[#allocation34_spill] sm:$0xff]  ;;  %s566_s7 = sshll.u32 %s1682_s18, 4  ;;  %v505_v61 = vadd.f32 %v488_v15, %v1379_v48  ;;  %514 = vst [vmem:[%s1682_s18] sm:$0xff] %v497_v7  ;;  %v506_v62 = vadd.f32 %v489_v19, %v1382_v47  ;;  %515 = vst [vmem:[%s1682_s18 + $0x8] sm:$0xff] %v498_v8  ;;  %s537_s10 = scalar_lea.sflag [#allocation10], %s1147_s15  ;;  %s1713_s7 = int_to_ptr.vmem [resolvable:$true] %s566_s7 }
  0xc2   : > { %v491_v31 = vmul.f32 %v1882_v20, %v1457_v56  ;;  %v492_v37 = vmul.f32 %v1885_v24, %v1457_v56  ;;  %v493_v44 = vmul.f32 %v1888_v39, %v1457_v56  ;;  %v1894_v38 = vsub.f32 %v1892_v34, %v1893_v27  ;;  %v1896_v4 = vld [vmem:[#allocation37_spill] sm:$0xff]  ;;  %516 = vst [vmem:[%s1682_s18 + $0x10] sm:$0xff] %v499_v9  ;;  %s876_s0 = scalar_lea.vmem %s1713_s7, 2176  ;;  %s959_s11 = smov [#allocation9]  }
  0xc3   : > { %v494_v26 = vmul.f32 %v1891_v49, %v1457_v56  ;;  %v1897_v5 = vsub.f32 %v1895_v3, %v1896_v4  ;;  %v507_v13 = vadd.f32 %v490_v53, %v1385_v42  ;;  %517 = vst [vmem:[%s1682_s18 + $0x18] sm:$0xff] %v500_v10  ;;  %518 = vst [vmem:[%s1682_s18 + $0x20] sm:$0xff] %v501_v12  ;;  %p877_p7 = scmp.ne.s32.totalorder %s1713_s7, %s876_s0  ;;  %s880_s29 = sshll.u32 %s959_s11, 4  ;;  %s881_s29 = int_to_ptr.vmem [resolvable:$false] %s880_s29 }
  0xc4   : > { %v495_v2 = vmul.f32 %v1894_v38, %v1457_v56  ;;  %v508_v14 = vadd.f32 %v491_v31, %v1881_v0  ;;  %v510_v48 = vadd.f32 %v493_v44, %v1887_v30  ;;  %520 = vst [vmem:[%s1682_s18 + $0x30] sm:$0xff] %v503_v55  ;;  %521 = vst [vmem:[%s1682_s18 + $0x38] sm:$0xff] %v504_v60  ;;  %s882_s14 = scalar_lea.vmem %s881_s29, 4352  ;;  %p883_p3 = scmp.lt.s32.totalorder %s1713_s7, %s881_s29 }
  0xc5   : > { %v496_v6 = vmul.f32 %v1897_v5, %v1457_v56  ;;  %v502_v56 = vadd.f32 %v485_v36, %v1354_v1  ;;  %v509_v1 = vadd.f32 %v492_v37, %v1884_v32  ;;  %v511_v47 = vadd.f32 %v494_v26, %v1890_v17  ;;  %522 = vst [vmem:[%s1682_s18 + $0x40] sm:$0xff] %v505_v61  ;;  %p878_p9 = pnand %p877_p7, %p1878_p12  ;;  %p884_p8 = scmp.lt.s32.totalorder %s882_s14, %s876_s0 }
  0xc6   : > { %v512_v42 = vadd.f32 %v495_v2, %v1893_v27  ;;  %523 = vst [vmem:[%s1682_s18 + $0x48] sm:$0xff] %v506_v62  ;;  %524 = vst [vmem:[%s1682_s18 + $0x50] sm:$0xff] %v507_v13 }
  0xc7   : > { %v513_v58 = vadd.f32 %v496_v6, %v1896_v4  ;;  %519 = vst [vmem:[%s1682_s18 + $0x28] sm:$0xff] %v502_v56  ;;  %525 = vst [vmem:[%s1682_s18 + $0x58] sm:$0xff] %v508_v14  ;;  %p879_p11 = pneg %p878_p9  ;;  %p885_p0 = por %p884_p8, %p883_p3 }
  0xc8   : > { %526 = vst [vmem:[%s1682_s18 + $0x60] sm:$0xff] %v509_v1  ;;  %527 = vst [vmem:[%s1682_s18 + $0x68] sm:$0xff] %v510_v48 }
  0xc9   : > { %528 = vst [vmem:[%s1682_s18 + $0x70] sm:$0xff] %v511_v47  ;;  %529 = vst [vmem:[%s1682_s18 + $0x78] sm:$0xff] %v512_v42  ;;  %p886_p2 = pnand %p885_p0, %p879_p11 }
  0xca   : > { %530 = vst [vmem:[%s1682_s18 + $0x80] sm:$0xff] %v513_v58 }
  0xcb   : > { %889 = shalt.err (!%p886_p2)
}
  0xcc   : > { %s890_s12 = scalar_lea.hbm %s1711_s24, 2176  ;;  %s894_s16 = scalar_lea.hbm %s1773_s5, 4352 }
  0xcd   : > { %p891_p4 = scmp.ne.s32.totalorder %s1711_s24, %s890_s12  ;;  %p895_p1 = scmp.lt.u32.totalorder %s1711_s24, %s1773_s5 }
  0xce   : > { %p896_p10 = scmp.lt.u32.totalorder %s894_s16, %s890_s12  ;;  %p898_p7 = scmp.lt.u32.totalorder %s890_s12, %s1711_s24 }
  0xcf   : > { %p892_p6 = pnand %p891_p4, %p1878_p12 }
  0xd0   : > { %p897_p5 = por %p896_p10, %p895_p1 }
  0xd1   : > { %p893_p13 = pneg %p892_p6 }
  0xd2   : > { %p899_p9 = por %p898_p7, %p897_p5 }
  0xd4   : > { %p900_p11 = pnand %p899_p9, %p893_p13 }
  0xd6   : > { %903 = shalt.err (!%p900_p11)
}
  0xd7   : > { %731 = dma.vmem_to_hbm [thread:$0]  (%p1878_p12), %s1713_s7, 2176, %s1711_s24, %s537_s10, %s957_s26, %s957_s26, %s958_s19  }
  0xd8 PF: > { %s581_s8 = sand.u32 1, %s938_s20   ;;  %p1898_p3 = scmp.ne.s32.totalorder %s1813_s6, 0 }
  0xd9   : > { %p1899_p8 = scmp.ge.s32.totalorder %s950_s23, 2  ;;  %s582_s17 = scalar_lea.sflag [#allocation5], %s581_s8 }
  0xdb   : > { %p742_p0 = pnand %p1899_p8, %p1898_p3 }
  0xdd   : > { %929 = dma.done.wait (!%p742_p0), %s582_s17, 2176  }
  0xde   : > { %931 = vsyncadd (!%p742_p0), %s582_s17, 4294965120  ;;  %s591_s30 = scalar_lea.sflag [#allocation10], %s581_s8 }
  0xdf   : > { %933 = dma.done.wait (!%p742_p0), %s591_s30, 2176  }
  0xe0   : > { %935 = vsyncadd (!%p742_p0), %s591_s30, 4294965120  ;;  %p26_p12 = scmp.ge.s32.totalorder %s1018_s25, 4   ;;  %s1900_s20 = smov %s942_s21 }
  0xe1   : > { %s1901_s21 = smov %s946_s22  ;;  %s1902_s22 = smov %s1030_s28 }
  0xe2   : > { %s1903_s23 = smov %s1018_s25  ;;  %28 = sbr.rel (!%p26_p12) target bundleno = 11 (0xb), region = 114 }
  0xe9   :  { %596 = vsyncpa [#allocation4], 1 }
  0xea   :  { %598 = vsyncpa [#allocation4 + $0x1], 1 }
  0xeb   :  { %599 = vsyncpa [#allocation7], 1 }
  0xec   :  { %601 = vsyncpa [#allocation7 + $0x1], 1 }
  0xed   :  { %602 = vsyncpa [#allocation5], 1 }
  0xee   :  { %604 = vsyncpa [#allocation5 + $0x1], 1 }
  0xef   :  { %605 = vsyncpa [#allocation10], 1 }
  0xf0   :  { %607 = vsyncpa [#allocation10 + $0x1], 1 }

</bundles_post_ra>
